<compile_context>
chip_gen: v6e
topology: v6e:2x2x1
jax: 0.10.0
libtpu: 0.0.40
codegen_flags: <defaults>
</compile_context>

<pallas_src>
import functools

import jax
import jax.numpy as jnp
from jax.experimental import pallas as pl
from jax.experimental.pallas import tpu as pltpu


def _classify_kernel(x_ref, w_ref, b_ref, o_ref, acc_ref, *, inv_hw: float):
    # x_ref: (tn, tc1, HW)   w_ref: (tc1, C2)   b_ref: (1, C2)
    # o_ref: (tn, C2)        acc_ref: (tn, C2) f32 VMEM scratch
    k = pl.program_id(1)

    @pl.when(k == 0)
    def _():
        acc_ref[...] = jnp.zeros_like(acc_ref)

    # Global average pool over the lane-dense spatial axis; f32 accumulation without
    # materializing an f32 copy of the whole input tile.
    pooled = jnp.sum(x_ref[...], axis=-1, dtype=jnp.float32) * inv_hw          # (tn, tc1)

    # Partial 1x1-conv (== dense) matmul on the MXU in the weight's dtype, f32 accumulate.
    acc_ref[...] += jnp.dot(pooled.astype(w_ref.dtype), w_ref[...],
                            preferred_element_type=jnp.float32)

    @pl.when(k == pl.num_programs(1) - 1)
    def _():
        o_ref[...] = (acc_ref[...] + b_ref[...].astype(jnp.float32)).astype(o_ref.dtype)


def _largest_divisor(total, limit, multiple):
    """Largest divisor of `total` that is a multiple of `multiple` and <= limit, else None."""
    best = None
    d = multiple
    hi = min(total, max(limit, 0))
    while d <= hi:
        if total % d == 0:
            best = d
        d += multiple
    return best


def classify_forward(x, weight, bias, *, batch_tile=None, channel_tile=None):
    """Pallas implementation of Classify.forward for a single NCHW tensor.

    x:      (N, C1, H, W)
    weight: (C2, C1, 1, 1) or (C2, C1)   (PyTorch Conv2d weight layout)
    bias:   (C2,)
    returns (N, C2)
    """
    N, C1, H, W = x.shape
    HW = H * W
    C2 = weight.shape[0]

    # Keep weight/bias in their native dtype (no per-step f32 cast inside the kernel).
    w_t = jnp.transpose(weight.reshape(C2, C1), (1, 0))   # (C1, C2): kernel does pooled @ w_t
    b2 = bias.reshape(1, C2)
    # Lane-dense spatial axis: free metadata reshape for contiguous NCHW.
    x3 = x.reshape(N, C1, HW)

    itemsize = x3.dtype.itemsize
    row_bytes = HW * itemsize                                # bytes of one (channel) row

    # --- channel tile (last grid axis, "arbitrary" reduction) ------------------------
    # Layout rule: second-to-last block dim must be a multiple of 8 or equal the full dim.
    per_row_budget = 2 * 1024 * 1024                         # channel*spatial bytes per batch row
    if channel_tile is not None:
        tc1 = channel_tile
        assert C1 % tc1 == 0 and (tc1 % 8 == 0 or tc1 == C1), "bad channel_tile"
    elif C1 * row_bytes <= per_row_budget or C1 < 8:
        tc1 = C1
    else:
        tc1 = (_largest_divisor(C1, per_row_budget // max(row_bytes, 1), 8)
               or _largest_divisor(C1, C1, 8)
               or C1)

    # --- batch tile (leading grid axis, "parallel") -----------------------------------
    # Layout rule (from the (tn, C2) output block): tn multiple of 8 or tn == N.
    x_buffer_budget = 8 * 1024 * 1024                        # ~8 MiB per x buffer (v7x-safe x2)
    if batch_tile is not None:
        tn = batch_tile
        assert N % tn == 0 and (tn % 8 == 0 or tn == N), "bad batch_tile"
    else:
        target_rows = max(1, x_buffer_budget // max(tc1 * row_bytes, 1))
        tn = (_largest_divisor(N, target_rows, 8)
              or _largest_divisor(N, N, 8)
              or N)

    grid = (N // tn, C1 // tc1)
    kernel = functools.partial(_classify_kernel, inv_hw=1.0 / float(HW))

    grid_spec = pltpu.PrefetchScalarGridSpec(
        num_scalar_prefetch=0,
        grid=grid,
        in_specs=[
            pl.BlockSpec((tn, tc1, HW), lambda n, k: (n, k, 0)),   # lane-dense image tile
            pl.BlockSpec((tc1, C2), lambda n, k: (k, 0)),          # matching weight slice
            pl.BlockSpec((1, C2), lambda n, k: (0, 0)),            # bias (resident)
        ],
        out_specs=pl.BlockSpec((tn, C2), lambda n, k: (n, 0)),     # same block across k (acc)
        scratch_shapes=[pltpu.VMEM((tn, C2), jnp.float32)],        # f32 accumulator
    )

    # Explicit VMEM budget (double-buffered inputs/outputs + accumulator), capped below
    # v7x's 64 MiB physical VMEM.
    vmem_estimate = (2 * tn * tc1 * HW * itemsize
                     + 2 * tc1 * C2 * w_t.dtype.itemsize
                     + 2 * C2 * b2.dtype.itemsize
                     + 3 * tn * C2 * 4)
    vmem_limit = int(min(64 * 1024 * 1024,
                         max(2 * vmem_estimate + (1 << 20), 16 * 1024 * 1024)))

    cost = pl.CostEstimate(
        flops=2 * N * C1 * (HW + C2),
        transcendentals=0,
        bytes_accessed=(N * C1 * HW * itemsize
                        + C1 * C2 * w_t.dtype.itemsize
                        + C2 * b2.dtype.itemsize
                        + N * C2 * itemsize),
    )

    return pl.pallas_call(
        kernel,
        out_shape=jax.ShapeDtypeStruct((N, C2), x.dtype),
        grid_spec=grid_spec,
        compiler_params=pltpu.CompilerParams(
            dimension_semantics=("parallel", "arbitrary"),
            vmem_limit_bytes=vmem_limit,
        ),
        cost_estimate=cost,
    )(x3, w_t, b2)


def classify_ref(x, weight, bias):
    """Pure-JAX reference matching the PyTorch module (single-tensor path)."""
    C2 = weight.shape[0]
    w2 = weight.reshape(C2, -1)
    pooled = jnp.mean(x.astype(jnp.float32), axis=(2, 3))            # (N, C1)
    out = pooled @ w2.T.astype(jnp.float32) + bias.astype(jnp.float32)
    return out.astype(x.dtype)                                       # (N, C2)


if __name__ == "__main__":
    key = jax.random.PRNGKey(0)
    kx, kw, kb, kx2, kw2, kb2 = jax.random.split(key, 6)

    # Case 1: small shapes matching the module defaults (single-step grid path).
    N, C1, H, W, C2 = 2, 4, 16, 16, 8
    x = jax.random.normal(kx, (N, C1, H, W), dtype=jnp.float32)
    weight = jax.random.normal(kw, (C2, C1, 1, 1), dtype=jnp.float32) * 0.1
    bias = jax.random.normal(kb, (C2,), dtype=jnp.float32) * 0.1

    out = jax.block_until_ready(classify_forward(x, weight, bias))
    ref = classify_ref(x, weight, bias)
    assert out.shape == (N, C2), out.shape
    assert out.dtype == x.dtype
    assert jnp.allclose(out, ref, rtol=1e-5, atol=1e-5), float(jnp.max(jnp.abs(out - ref)))

    # Case 2: exercise the multi-step (batch x channel-reduction) grid + accumulator path.
    N2, C12, H2, W2, C22 = 16, 32, 8, 8, 16
    x2 = jax.random.normal(kx2, (N2, C12, H2, W2), dtype=jnp.float32)
    weight2 = jax.random.normal(kw2, (C22, C12, 1, 1), dtype=jnp.float32) * 0.05
    bias2 = jax.random.normal(kb2, (C22,), dtype=jnp.float32) * 0.1

    out2 = jax.block_until_ready(
        classify_forward(x2, weight2, bias2, batch_tile=8, channel_tile=16))
    ref2 = classify_ref(x2, weight2, bias2)
    assert out2.shape == (N2, C22), out2.shape
    assert jnp.allclose(out2, ref2, rtol=1e-5, atol=1e-5), float(jnp.max(jnp.abs(out2 - ref2)))

    print("KERNEL_OK")
</pallas_src>

<mosaic_0001>
module attributes {stable_mosaic.version = 11 : i64} {
  func.func @_classify_kernel(%arg0: i32, %arg1: i32, %arg2: memref<2x4x256xf32, #tpu.memory_space<vmem>>, %arg3: memref<4x8xf32, #tpu.memory_space<vmem>>, %arg4: memref<1x8xf32, #tpu.memory_space<vmem>>, %arg5: memref<2x8xf32, #tpu.memory_space<vmem>>, %arg6: memref<2x8xf32, #tpu.memory_space<vmem>>) attributes {dimension_semantics = [#tpu.dimension_semantics<parallel>, #tpu.dimension_semantics<arbitrary>], iteration_bounds = array<i64: 1, 1>, scalar_prefetch = 0 : i64, scratch_operands = 1 : i64, tpu.core_type = #tpu.core_type<tc>, window_params = [{transform_indices = @transform_0, window_bounds = array<i64: 2, 4, 256>}, {transform_indices = @transform_1, window_bounds = array<i64: 4, 8>}, {pipeline_mode = #tpu.pipeline_mode<synchronous>, transform_indices = @transform_2, window_bounds = array<i64: 1, 8>}, {transform_indices = @transform_3, window_bounds = array<i64: 2, 8>}]} {
    %c0_i32 = arith.constant 0 : i32
    %0 = arith.cmpi eq, %arg1, %c0_i32 : i32
    %1 = arith.extui %0 : i1 to i32
    %c0_i32_0 = arith.constant 0 : i32
    %2 = arith.cmpi ne, %1, %c0_i32_0 : i32
    scf.if %2 {
      %cst_13 = arith.constant 0.000000e+00 : f32
      %15 = vector.broadcast %cst_13 : f32 to vector<2x8xf32>
      %c0_14 = arith.constant 0 : index
      %c0_15 = arith.constant 0 : index
      %16 = vector.load %arg6[%c0_14, %c0_15] : memref<2x8xf32, #tpu.memory_space<vmem>>, vector<2x8xf32>
      tpu.vector_store %arg6[%c0_14, %c0_15], %15 {strides = array<i32>} : memref<2x8xf32, #tpu.memory_space<vmem>>, vector<2x8xf32>,
    } else {
    }
    %c0 = arith.constant 0 : index
    %c0_1 = arith.constant 0 : index
    %c0_2 = arith.constant 0 : index
    %3 = vector.load %arg2[%c0, %c0_1, %c0_2] : memref<2x4x256xf32, #tpu.memory_space<vmem>>, vector<2x4x256xf32>
    %cst = arith.constant dense<0.000000e+00> : vector<2x4xf32>
    %4 = vector.multi_reduction <add>, %3, %cst [2] : vector<2x4x256xf32> to vector<2x4xf32>
    %cst_3 = arith.constant 3.906250e-03 : f32
    %5 = vector.broadcast %cst_3 : f32 to vector<2x4xf32>
    %6 = arith.mulf %4, %5 : vector<2x4xf32>
    %c0_4 = arith.constant 0 : index
    %c0_5 = arith.constant 0 : index
    %7 = vector.load %arg6[%c0_4, %c0_5] : memref<2x8xf32, #tpu.memory_space<vmem>>, vector<2x8xf32>
    %c0_6 = arith.constant 0 : index
    %c0_7 = arith.constant 0 : index
    %8 = vector.load %arg3[%c0_6, %c0_7] : memref<4x8xf32, #tpu.memory_space<vmem>>, vector<4x8xf32>
    %cst_8 = arith.constant dense<0.000000e+00> : vector<2x8xf32>
    %9 = tpu.matmul %6, %8, %cst_8 {dimension_numbers = #tpu.dot_dimension_numbers<[1], [0], [0], [1], [0, 0, 1, 1], [], []>} : vector<2x4xf32>, vector<4x8xf32>, vector<2x8xf32> -> vector<2x8xf32>
    %10 = arith.addf %7, %9 : vector<2x8xf32>
    %c0_9 = arith.constant 0 : index
    %c0_10 = arith.constant 0 : index
    %11 = vector.load %arg6[%c0_9, %c0_10] : memref<2x8xf32, #tpu.memory_space<vmem>>, vector<2x8xf32>
    tpu.vector_store %arg6[%c0_9, %c0_10], %10 {strides = array<i32>} : memref<2x8xf32, #tpu.memory_space<vmem>>, vector<2x8xf32>,
    %c0_i32_11 = arith.constant 0 : i32
    %12 = arith.cmpi eq, %arg1, %c0_i32_11 : i32
    %13 = arith.extui %12 : i1 to i32
    %c0_i32_12 = arith.constant 0 : i32
    %14 = arith.cmpi ne, %13, %c0_i32_12 : i32
    scf.if %14 {
      %c0_13 = arith.constant 0 : index
      %c0_14 = arith.constant 0 : index
      %15 = vector.load %arg6[%c0_13, %c0_14] : memref<2x8xf32, #tpu.memory_space<vmem>>, vector<2x8xf32>
      %c0_15 = arith.constant 0 : index
      %c0_16 = arith.constant 0 : index
      %16 = vector.load %arg4[%c0_15, %c0_16] : memref<1x8xf32, #tpu.memory_space<vmem>>, vector<1x8xf32>
      %17 = vector.broadcast %16 : vector<1x8xf32> to vector<2x8xf32>
      %18 = arith.addf %15, %17 : vector<2x8xf32>
      %c0_17 = arith.constant 0 : index
      %c0_18 = arith.constant 0 : index
      %19 = vector.load %arg5[%c0_17, %c0_18] : memref<2x8xf32, #tpu.memory_space<vmem>>, vector<2x8xf32>
      tpu.vector_store %arg5[%c0_17, %c0_18], %18 {strides = array<i32>} : memref<2x8xf32, #tpu.memory_space<vmem>>, vector<2x8xf32>,
    } else {
    }
    return
  }
  func.func @transform_0(%arg0: i32, %arg1: i32) -> (i32, i32, i32) {
    %c0_i32 = arith.constant 0 : i32
    %c0_i32_0 = arith.constant 0 : i32
    return %arg0, %arg1, %c0_i32 : i32, i32, i32
  }
  func.func @transform_1(%arg0: i32, %arg1: i32) -> (i32, i32) {
    %c0_i32 = arith.constant 0 : i32
    %c0_i32_0 = arith.constant 0 : i32
    return %arg1, %c0_i32 : i32, i32
  }
  func.func @transform_2(%arg0: i32, %arg1: i32) -> (i32, i32) {
    %c0_i32 = arith.constant 0 : i32
    %c0_i32_0 = arith.constant 0 : i32
    %c0_i32_1 = arith.constant 0 : i32
    return %c0_i32, %c0_i32_0 : i32, i32
  }
  func.func @transform_3(%arg0: i32, %arg1: i32) -> (i32, i32) {
    %c0_i32 = arith.constant 0 : i32
    %c0_i32_0 = arith.constant 0 : i32
    return %arg0, %c0_i32 : i32, i32
  }
}

</mosaic_0001>

<bundles_post_ra>
// kernel: tpu_custom_call.1
= control target key start
LH: loop header
LB: loop body
LE: loop exit
PB: predicated region body
PF: predicated region fallthrough
CT: control target
= control target key end

     0   :  { %8 = vsyncpa [#allocation4], 0  ;;  %s324_s0 = inlined_call_operand.hbm [shape: f32[2,4,256], index: 0, kind: input, shape index: {}]   ;;  %s325_s1 = inlined_call_operand.hbm [shape: f32[4,8], index: 1, kind: input, shape index: {}]   ;;  %s326_s2 = inlined_call_operand.vmem [shape: f32[1,8], index: 2, kind: input, shape index: {}]   ;;  %s327_s3 = inlined_call_operand.hbm [shape: f32[2,8], index: 3, kind: output, shape index: {}]  }
   0x1   :  { %9 = vsyncpa [#allocation7], 0 }
   0x2   :  { %10 = vsyncpa [#allocation5], 0  ;;  %s277_s12 = smov [#allocation3]  }
   0x3   :  { %s16_s13 = sshll.u32 %s277_s12, 4  ;;  %s17_s13 = int_to_ptr.vmem [resolvable:$true] %s16_s13 }
   0x4   :  { %s219_s14 = scalar_lea.vmem %s17_s13, 256  ;;  %p224_p1 = scmp.lt.s32.totalorder %s17_s13, %s17_s13 }
   0x5   :  { %p220_p0 = scmp.ne.s32.totalorder %s17_s13, %s219_s14  ;;  %p225_p2 = scmp.lt.s32.totalorder %s219_s14, %s219_s14 }
   0x7   :  { %p226_p3 = por %p225_p2, %p224_p1 }
   0x9   :  { %p227_p4 = pnand %p226_p3, %p220_p0 }
   0xb   :  { %230 = shalt.err (!%p227_p4)
}
   0xc   :  { %s278_s15 = smov 128   ;;  %s279_s16 = smov 8  }
   0xd   :  { %22 = dma.hbm_to_vmem [thread:$0]  %s324_s0, 256, %s17_s13, [#allocation4], %s278_s15, %s278_s15, %s279_s16  }
   0xe   :  { %s280_s19 = smov [#allocation6]  }
   0xf   :  { %s29_s20 = sshll.u32 %s280_s19, 4  ;;  %s30_s20 = int_to_ptr.vmem [resolvable:$true] %s29_s20 }
  0x10   :  { %s239_s21 = scalar_lea.vmem %s30_s20, 64  ;;  %p244_p6 = scmp.lt.s32.totalorder %s30_s20, %s30_s20 }
  0x11   :  { %p240_p5 = scmp.ne.s32.totalorder %s30_s20, %s239_s21  ;;  %p245_p7 = scmp.lt.s32.totalorder %s239_s21, %s239_s21 }
  0x13   :  { %p246_p8 = por %p245_p7, %p244_p6 }
  0x15   :  { %p247_p9 = pnand %p246_p8, %p240_p5 }
  0x17   :  { %250 = shalt.err (!%p247_p9)
}
  0x18   :  { %32 = dma.hbm_to_vmem [thread:$0]  %s325_s1, 64, %s30_s20, [#allocation7]  }
  0x19   :  { %271 = dma.done.wait [#allocation4], 256  }
  0x1a   :  { %272 = vsyncadd [#allocation4], 4294967040 }
  0x1b   :  { %273 = dma.done.wait [#allocation7], 64  }
  0x1c   :  { %274 = vsyncadd [#allocation7], 4294967232  ;;  %vm55_vm0 = vcmask 1043456   ;;  %v47_v0 = vld [vmem:[#allocation3] sm:$0xff]  ;;  %v48_v1 = vld [vmem:[#allocation3 + $0x8] sm:$0xff]  ;;  %vm45_vm1 = vcmask 58368   ;;  %v72_v12 = vlaneseq }
  0x1d   :  { %v51_v2 = vcombine.high %v47_v0, %v47_v0  ;;  %v56_v3 = vsel %vm55_vm0, %v47_v0, 0.0  ;;  %v52_v4 = vcombine.high %v48_v1, %v48_v1  ;;  %v61_v6 = vsel %vm55_vm0, %v48_v1, 0.0  ;;  %v69_v10 = vld [vmem:[#allocation6] sm:$0xf]  ;;  %v194_v27 = vld [vmem:[%s326_s2] ss:$0 sm:$0xff] }
  0x1e   :  { %v281_v11 = vmov 0.0   ;;  %vm282_vm2 = vmmov 0   ;;  %v73_v13 = vand.u32 127, %v72_v12  ;;  %v75_v14 = vshrl.u32 %v72_v12, 7  ;;  %s283_s24 = smov [#allocation8]  }
  0x1f   :  { %v57_v5 = vsel %vm55_vm0, %v51_v2, 0.0  ;;  %v62_v7 = vsel %vm55_vm0, %v52_v4, 0.0  ;;  %46 = vst.msk [vmem:[#allocation2] sm:$0x3] %vm45_vm1, %v281_v11  ;;  %197 = vmatprep.subr.mxu0 %v281_v11  ;;  %199 = vmatprep.mubr.msk.f32.mxu0 %vm282_vm2, %v281_v11  ;;  %vm82_vm3 = vcmask 1041409   ;;  %vm84_vm4 = vcmask 31744  }
  0x20   :  { %v58_v8 = vadd.f32 %v57_v5, %v56_v3  ;;  %v63_v9 = vadd.f32 %v62_v7, %v61_v6  ;;  %198 = vmatpush3.msk.msra.mxu0 %vm55_vm0, %v69_v10  ;;  %v76_v16 = vsub.s32 %v73_v13, %v75_v14  ;;  %s182_s25 = sshll.u32 %s283_s24, 4  ;;  %s183_s25 = int_to_ptr.vmem [resolvable:$true] %s182_s25 }
  0x21   :  { %s251_s26 = scalar_lea.vmem %s183_s25, 32  ;;  %p256_p11 = scmp.lt.s32.totalorder %s183_s25, %s183_s25 }
  0x22   :  { %59 = vadd.xlane.f32.xlu0 %v58_v8  ;;  %p252_p10 = scmp.ne.s32.totalorder %s183_s25, %s251_s26  ;;  %p257_p12 = scmp.lt.s32.totalorder %s251_s26, %s251_s26 }
  0x24   :  { %p258_p13 = por %p257_p12, %p256_p11 }
  0x26   :  { %64 = vadd.xlane.f32.xlu0 %v63_v9  ;;  %v68_v23 = vld [vmem:[#allocation2] sm:$0x3]  ;;  %p259_p0 = pnand %p258_p13, %p252_p10 }
  0xab   :  { %v60_v15 = vpop.xlane.xlu0 %59 }
  0xac   :  { %v66_v17 = vmul.f32 0.00390625, %v60_v15 }
  0xae   :  { %v77_v20 = vrot.slane %v66_v17, %v76_v16 }
  0xaf   :  { %v65_v18 = vpop.xlane.xlu0 %64 }
  0xb0   :  { %v67_v19 = vmul.f32 0.00390625, %v65_v18 }
  0xb2   :  { %v81_v21 = vrot.slane %v67_v19, %v76_v16 }
  0xb4   :  { %v83_v22 = vsel %vm82_vm3, %v81_v21, %v77_v20 }
  0xb5   :  { %200 = vmatmul.mubr.msk.f32.vlgmr.msra.gmra.mxu0 %vm84_vm4, %v83_v22 }
 0x175   :  { %v156_v24 = vpop.f32.mrf.mxu0 }
 0x176   :  { %v160_v25 = vadd.f32 %v156_v24, %v68_v23 }
 0x177   :  { %v201_v26 = vpop.f32.mrf.mxu0 }
 0x178   :  { %162 = vst.msk [vmem:[#allocation2] sm:$0x3] %vm45_vm1, %v160_v25 }
 0x17f   :  { %v166_v28 = vld [vmem:[#allocation2] sm:$0x3] }
 0x180   :  { %v174_v29 = vadd.f32 %v194_v27, %v166_v28 }
 0x182   :  { %175 = vst.msk [vmem:[#allocation8] sm:$0x3] %vm45_vm1, %v174_v29 }
 0x183   :  { %262 = shalt.err (!%p259_p0)
}
 0x184   :  { %185 = dma.vmem_to_hbm [thread:$0]  %s183_s25, 32, %s327_s3, [#allocation5]  }
 0x185   :  { %275 = dma.done.wait [#allocation5], 32  }
 0x186   :  { %276 = vsyncadd [#allocation5], 4294967264 }
 0x187   :  { %189 = vsyncpa [#allocation4], 1 }
 0x188   :  { %190 = vsyncpa [#allocation7], 1 }
 0x189   :  { %191 = vsyncpa [#allocation5], 1 }

</bundles_post_ra>
